<compile_context>
chip_gen: v6e
topology: v6e:2x2x1
jax: 0.10.0
libtpu: 0.0.40
codegen_flags: <defaults>
</compile_context>

<pallas_src>
import functools
import math

import jax
import jax.numpy as jnp
from jax.experimental import pallas as pl
from jax.experimental.pallas import tpu as pltpu

_LN_EPS = 1e-5


# ---------------------------------------------------------------------------
# Hardware-aware defaults
# ---------------------------------------------------------------------------
def _tpu_vmem_capacity():
    try:
        return int(pltpu.get_tpu_info().vmem_capacity_bytes)
    except Exception:
        return 64 * 1024 * 1024  # conservative default (v7x physical VMEM)


def _vmem_limit_bytes():
    """Explicit scoped-VMEM budget: ~3/4 of physical VMEM for this generation."""
    cap = _tpu_vmem_capacity()
    return int(min(cap * 3 // 4, 100 * 1024 * 1024))


def _default_block_m():
    # v5e/v6e (128 MiB VMEM): 512-token tiles; v7x (64 MiB): 256.
    return 512 if _tpu_vmem_capacity() >= (100 << 20) else 256


def _default_hidden_tile():
    return 1024 if _tpu_vmem_capacity() >= (100 << 20) else 512


def _compiler_params(dim_semantics):
    return pltpu.CompilerParams(
        dimension_semantics=dim_semantics,
        vmem_limit_bytes=_vmem_limit_bytes(),
    )


# ---------------------------------------------------------------------------
# Tiling helpers
# ---------------------------------------------------------------------------
def _round_up(x, m):
    return ((x + m - 1) // m) * m


def _pick_hidden_tile(h, target):
    """Largest H-tile <= target that divides H and is a multiple of 128."""
    if h <= target:
        return h
    for d in range(target, 127, -1):
        if d % 128 == 0 and h % d == 0:
            return d
    return h  # fallback: fully resident


def _pad_rows(a, m_pad):
    m = a.shape[0]
    if m_pad == m:
        return a
    return jnp.pad(a, ((0, m_pad - m), (0, 0)))


# ---------------------------------------------------------------------------
# Buffered(1) capability probe (scoped; failure only widens weight specs)
# ---------------------------------------------------------------------------
_SINGLE_BUFFER_OK = None


def _single_buffer_weights_supported():
    global _SINGLE_BUFFER_OK
    if _SINGLE_BUFFER_OK is None:
        def _probe(w_ref, x_ref, o_ref):
            o_ref[...] = x_ref[...] + w_ref[...]
        try:
            x = jnp.zeros((16, 128), jnp.float32)
            w = jnp.zeros((8, 128), jnp.float32)
            out = pl.pallas_call(
                _probe,
                out_shape=jax.ShapeDtypeStruct((16, 128), jnp.float32),
                grid=(2,),
                in_specs=[
                    pl.BlockSpec((8, 128), lambda i: (0, 0),
                                 pipeline_mode=pl.Buffered(1)),
                    pl.BlockSpec((8, 128), lambda i: (i, 0)),
                ],
                out_specs=pl.BlockSpec((8, 128), lambda i: (i, 0)),
            )(w, x)
            jax.block_until_ready(out)
            _SINGLE_BUFFER_OK = True
        except Exception:
            _SINGLE_BUFFER_OK = False
    return _SINGLE_BUFFER_OK


def _resident_spec(block_shape, n_grid, single_buffer):
    """Spec for weights/biases with a constant index_map: the same block is
    revisited every grid step, so a single buffer suffices (halves VMEM)."""
    zeros = (0,) * len(block_shape)
    index_map = (lambda i: zeros) if n_grid == 1 else (lambda i, k: zeros)
    if single_buffer:
        return pl.BlockSpec(block_shape, index_map, pipeline_mode=pl.Buffered(1))
    return pl.BlockSpec(block_shape, index_map)


# ---------------------------------------------------------------------------
# Math helpers (all f32)
# ---------------------------------------------------------------------------
def _layernorm_f32(x, gamma, beta):
    mu = jnp.mean(x, axis=-1, keepdims=True)
    xc = x - mu
    var = jnp.mean(xc * xc, axis=-1, keepdims=True)
    return xc * jax.lax.rsqrt(var + _LN_EPS) * gamma + beta


def _gelu_tanh(x):
    # GELU tanh approximation, matching torch.nn.GELU(approximate='tanh').
    c = math.sqrt(2.0 / math.pi)
    return 0.5 * x * (1.0 + jnp.tanh(c * (x + 0.044715 * x * x * x)))


# ---------------------------------------------------------------------------
# Kernels
# ---------------------------------------------------------------------------
def _ln_qkv_kernel(x_ref, g_ref, b_ref, w_ref, wb_ref, o_ref):
    # o = LayerNorm(x) @ W_attn + b_attn   (LN + bias + accumulation in f32)
    x = x_ref[...].astype(jnp.float32)
    xn = _layernorm_f32(x, g_ref[...].astype(jnp.float32),
                        b_ref[...].astype(jnp.float32))
    y = jnp.dot(xn.astype(w_ref.dtype), w_ref[...],
                preferred_element_type=jnp.float32)
    o_ref[...] = (y + wb_ref[...].astype(jnp.float32)).astype(o_ref.dtype)


def _causal_attn_kernel(qkv_ref, o_ref, *, n_head, head_dim):
    # One batch element: per-head causal softmax(q k^T / sqrt(hd)) @ v.
    # q/k/v are sliced straight from the (T, 3C) qkv slab (no XLA transposes);
    # MXU inputs stay in their native dtype (bf16 fast path), softmax in f32.
    qkv = qkv_ref[0]                               # (T, 3C)
    T = qkv.shape[0]
    C = n_head * head_dim
    scale = 1.0 / math.sqrt(head_dim)

    # Causal mask built once per grid step from (T,1)/(1,T) iotas.
    rows = jax.lax.broadcasted_iota(jnp.int32, (T, 1), 0)
    cols = jax.lax.broadcasted_iota(jnp.int32, (1, T), 1)
    causal = cols <= rows                          # (T, T) bool

    outs = []
    for h in range(n_head):
        q = qkv[:, h * head_dim:(h + 1) * head_dim]
        k = qkv[:, C + h * head_dim:C + (h + 1) * head_dim]
        v = qkv[:, 2 * C + h * head_dim:2 * C + (h + 1) * head_dim]
        # Fold 1/sqrt(hd) into q (T x hd) instead of scaling the T x T scores.
        q = q * jnp.asarray(scale, dtype=q.dtype)
        s = jax.lax.dot_general(q, k, (((1,), (1,)), ((), ())),
                                preferred_element_type=jnp.float32)
        s = jnp.where(causal, s, -jnp.inf)
        m = jnp.max(s, axis=-1, keepdims=True)
        p = jnp.exp(s - m)
        l = jnp.sum(p, axis=-1, keepdims=True)
        r = pl.reciprocal(l, approx=True)          # EUP slot
        r = r * (2.0 - l * r)                      # one Newton step -> ~f32 exact
        o = jnp.dot(p.astype(v.dtype), v,
                    preferred_element_type=jnp.float32) * r
        outs.append(o.astype(o_ref.dtype))
    # Single lane-dense (T, C) store instead of per-head partial stores.
    o_ref[0] = jnp.concatenate(outs, axis=-1)


def _proj_res_ln_mlp_kernel(y_ref, res_ref, wap_ref, bap_ref, g_ref, b_ref,
                            wfc_ref, bfc_ref, wpr_ref, bpr_ref, o_ref,
                            x_sc, xn_sc, acc_sc):
    # Fused:  x' = res + y @ W_attnproj + b_attnproj
    #         o  = x' + GELU(LayerNorm(x') @ W_fc + b_fc) @ W_proj + b_proj
    # Hidden dim H streamed along grid axis 1 ("arbitrary") with f32 accumulator.
    k = pl.program_id(1)

    @pl.when(k == 0)
    def _():
        x = jnp.dot(y_ref[...].astype(wap_ref.dtype), wap_ref[...],
                    preferred_element_type=jnp.float32)
        x = x + bap_ref[...].astype(jnp.float32) + res_ref[...].astype(jnp.float32)
        x_sc[...] = x
        xn_sc[...] = _layernorm_f32(x, g_ref[...].astype(jnp.float32),
                                    b_ref[...].astype(jnp.float32))
        acc_sc[...] = jnp.zeros_like(acc_sc)

    h = jnp.dot(xn_sc[...].astype(wfc_ref.dtype), wfc_ref[...],
                preferred_element_type=jnp.float32)
    h = h + bfc_ref[...].astype(jnp.float32)       # bias once per tile, in f32
    acc_sc[...] += jnp.dot(_gelu_tanh(h).astype(wpr_ref.dtype), wpr_ref[...],
                           preferred_element_type=jnp.float32)

    @pl.when(k == pl.num_programs(1) - 1)
    def _():
        o_ref[...] = (acc_sc[...] + bpr_ref[...].astype(jnp.float32)
                      + x_sc[...]).astype(o_ref.dtype)


# ---------------------------------------------------------------------------
# pallas_call wrappers
# ---------------------------------------------------------------------------
def _ln_qkv(x2d, gamma, beta, w, b, *, bm, out_dtype, single_buffer):
    M, C = x2d.shape
    N = w.shape[1]
    return pl.pallas_call(
        _ln_qkv_kernel,
        out_shape=jax.ShapeDtypeStruct((M, N), out_dtype),
        grid_spec=pltpu.PrefetchScalarGridSpec(
            num_scalar_prefetch=0,
            grid=(M // bm,),
            in_specs=[
                pl.BlockSpec((bm, C), lambda i: (i, 0)),     # x tile
                _resident_spec((1, C), 1, single_buffer),    # ln1 gamma
                _resident_spec((1, C), 1, single_buffer),    # ln1 beta
                _resident_spec((C, N), 1, single_buffer),    # W_attn (in, out)
                _resident_spec((1, N), 1, single_buffer),    # b_attn
            ],
            out_specs=pl.BlockSpec((bm, N), lambda i: (i, 0)),
        ),
        compiler_params=_compiler_params(("parallel",)),
    )(x2d, gamma, beta, w, b)


def _causal_attention(qkv, *, n_head, head_dim):
    # qkv: (B, T, 3C); one grid step per batch element (parallel across TCs).
    B, T, C3 = qkv.shape
    C = n_head * head_dim
    kernel = functools.partial(_causal_attn_kernel,
                               n_head=n_head, head_dim=head_dim)
    return pl.pallas_call(
        kernel,
        out_shape=jax.ShapeDtypeStruct((B, T, C), qkv.dtype),
        grid_spec=pltpu.PrefetchScalarGridSpec(
            num_scalar_prefetch=0,
            grid=(B,),
            in_specs=[pl.BlockSpec((1, T, C3), lambda b: (b, 0, 0))],
            out_specs=pl.BlockSpec((1, T, C), lambda b: (b, 0, 0)),
        ),
        compiler_params=_compiler_params(("parallel",)),
    )(qkv)


def _attnproj_ln_mlp(y2d, x2d, w_ap, b_ap, gamma, beta, w_fc, b_fc, w_pr, b_pr,
                     *, bm, th, out_dtype, single_buffer):
    M, C = x2d.shape
    H = w_fc.shape[1]
    return pl.pallas_call(
        _proj_res_ln_mlp_kernel,
        out_shape=jax.ShapeDtypeStruct((M, C), out_dtype),
        grid_spec=pltpu.PrefetchScalarGridSpec(
            num_scalar_prefetch=0,
            grid=(M // bm, H // th),
            in_specs=[
                pl.BlockSpec((bm, C), lambda i, k: (i, 0)),   # attention out tile
                pl.BlockSpec((bm, C), lambda i, k: (i, 0)),   # residual x tile
                _resident_spec((C, C), 2, single_buffer),     # W_attnproj
                _resident_spec((1, C), 2, single_buffer),     # b_attnproj
                _resident_spec((1, C), 2, single_buffer),     # ln2 gamma
                _resident_spec((1, C), 2, single_buffer),     # ln2 beta
                pl.BlockSpec((C, th), lambda i, k: (0, k)),   # W_fc H-slice
                pl.BlockSpec((1, th), lambda i, k: (0, k)),   # b_fc H-slice
                pl.BlockSpec((th, C), lambda i, k: (k, 0)),   # W_proj H-slice
                _resident_spec((1, C), 2, single_buffer),     # b_proj
            ],
            out_specs=pl.BlockSpec((bm, C), lambda i, k: (i, 0)),
            scratch_shapes=[pltpu.VMEM((bm, C), jnp.float32),   # x' (post-attn)
                            pltpu.VMEM((bm, C), jnp.float32),   # LayerNorm(x')
                            pltpu.VMEM((bm, C), jnp.float32)],  # MLP accumulator
        ),
        compiler_params=_compiler_params(("parallel", "arbitrary")),
    )(y2d, x2d, w_ap, b_ap, gamma, beta, w_fc, b_fc, w_pr, b_pr)


# ---------------------------------------------------------------------------
# Full Block forward
# ---------------------------------------------------------------------------
def block_forward(x, params, *, n_head, block_m=None, hidden_tile=None):
    """GPT-2 Block forward: x + attn(ln_1(x)), then + mlp(ln_2(x))."""
    B, T, C = x.shape
    assert C % n_head == 0
    head_dim = C // n_head
    M = B * T

    # bf16 fast path: intermediates (qkv, attention output) emitted in bf16 when
    # the weights are bf16; the residual stream / block output keeps x.dtype.
    w_dt = jnp.dtype(params["w_attn"].dtype)
    inter_dtype = jnp.bfloat16 if w_dt == jnp.bfloat16 else x.dtype

    if block_m is None:
        block_m = _default_block_m()
    if hidden_tile is None:
        hidden_tile = _default_hidden_tile()
    H = params["w_fc"].shape[1]
    th = _pick_hidden_tile(H, hidden_tile)
    bm = min(block_m, _round_up(M, 8))       # cdiv-style tiling, no gcd collapse
    m_pad = _round_up(M, bm)

    single_buffer = _single_buffer_weights_supported()

    row = lambda a: a.reshape(1, -1)
    x2d = x.reshape(M, C)
    x2d_p = _pad_rows(x2d, m_pad)

    # K1: qkv = LayerNorm(x) @ W_attn + b_attn
    qkv_p = _ln_qkv(x2d_p, row(params["ln1_g"]), row(params["ln1_b"]),
                    params["w_attn"], row(params["b_attn"]),
                    bm=bm, out_dtype=inter_dtype, single_buffer=single_buffer)
    qkv = qkv_p[:M] if m_pad != M else qkv_p
    qkv = qkv.reshape(B, T, 3 * C)           # pure reshape, no transpose

    # K2: causal attention, q/k/v read straight from the qkv slab.
    y = _causal_attention(qkv, n_head=n_head, head_dim=head_dim)   # (B, T, C)
    y2d_p = _pad_rows(y.reshape(M, C), m_pad)

    # K3: fused c_proj + residual + LN2 + MLP + residual.
    out_p = _attnproj_ln_mlp(
        y2d_p, x2d_p,
        params["w_attnproj"], row(params["b_attnproj"]),
        row(params["ln2_g"]), row(params["ln2_b"]),
        params["w_fc"], row(params["b_fc"]),
        params["w_proj"], row(params["b_proj"]),
        bm=bm, th=th, out_dtype=x.dtype, single_buffer=single_buffer)
    out = out_p[:M] if m_pad != M else out_p
    return out.reshape(B, T, C)


# ---------------------------------------------------------------------------
# Pure-JAX reference (f32)
# ---------------------------------------------------------------------------
def _ref_block(x, params, *, n_head):
    B, T, C = x.shape
    hd = C // n_head
    f32 = lambda a: a.astype(jnp.float32)

    def ln(z, g, b):
        mu = jnp.mean(z, axis=-1, keepdims=True)
        var = jnp.mean((z - mu) ** 2, axis=-1, keepdims=True)
        return (z - mu) / jnp.sqrt(var + _LN_EPS) * g + b

    h = ln(x, params["ln1_g"], params["ln1_b"])
    qkv = h @ f32(params["w_attn"]) + f32(params["b_attn"])
    q, k, v = jnp.split(qkv, 3, axis=-1)
    q = q.reshape(B, T, n_head, hd).transpose(0, 2, 1, 3)
    k = k.reshape(B, T, n_head, hd).transpose(0, 2, 1, 3)
    v = v.reshape(B, T, n_head, hd).transpose(0, 2, 1, 3)
    s = jnp.einsum("bhqd,bhkd->bhqk", q, k) / math.sqrt(hd)
    mask = jnp.tril(jnp.ones((T, T), dtype=bool))
    s = jnp.where(mask, s, -jnp.inf)
    p = jax.nn.softmax(s, axis=-1)
    y = jnp.einsum("bhqk,bhkd->bhqd", p, v)
    y = y.transpose(0, 2, 1, 3).reshape(B, T, C)
    x = x + y @ f32(params["w_attnproj"]) + f32(params["b_attnproj"])

    h = ln(x, params["ln2_g"], params["ln2_b"])
    h = h @ f32(params["w_fc"]) + f32(params["b_fc"])
    h = _gelu_tanh(h)
    return x + h @ f32(params["w_proj"]) + f32(params["b_proj"])


# ---------------------------------------------------------------------------
# Demo / self-check
# ---------------------------------------------------------------------------
if __name__ == "__main__":
    # Small GPT-2-style config: batch=2, seq=8, n_embd=32, n_head=2.
    # NOTE: C=32 (< 128 lanes) is a toy size -> partial-lane tiles; production
    # GPT-2 (C=768, T=1024) is lane-aligned and needs no change.
    B, T, C, n_head = 2, 8, 32, 2
    H = 4 * C

    key = jax.random.PRNGKey(0)
    ks = jax.random.split(key, 13)
    nrm = lambda k, shape, s: jax.random.normal(k, shape, dtype=jnp.float32) * s

    x = jax.random.normal(ks[0], (B, T, C), dtype=jnp.float32)
    # Linear weights stored as (in_features, out_features) == torch W.T.
    params = dict(
        ln1_g=1.0 + 0.1 * jax.random.normal(ks[9], (C,), jnp.float32),
        ln1_b=0.1 * jax.random.normal(ks[10], (C,), jnp.float32),
        w_attn=nrm(ks[1], (C, 3 * C), 0.02),
        b_attn=nrm(ks[2], (3 * C,), 0.02),
        w_attnproj=nrm(ks[3], (C, C), 0.02 / math.sqrt(2)),
        b_attnproj=nrm(ks[4], (C,), 0.02),
        ln2_g=1.0 + 0.1 * jax.random.normal(ks[11], (C,), jnp.float32),
        ln2_b=0.1 * jax.random.normal(ks[12], (C,), jnp.float32),
        w_fc=nrm(ks[5], (C, H), 0.02),
        b_fc=nrm(ks[6], (H,), 0.02),
        w_proj=nrm(ks[7], (H, C), 0.02 / math.sqrt(2)),
        b_proj=nrm(ks[8], (C,), 0.02),
    )

    ref = _ref_block(x, params, n_head=n_head)

    # f32 run (weights f32 -> intermediates stay f32).
    out = block_forward(x, params, n_head=n_head)
    out = jax.block_until_ready(out)
    assert out.shape == (B, T, C)
    assert jnp.allclose(out, ref, atol=2e-3, rtol=2e-3), "f32 mismatch vs reference"

    # bf16-weight run: bf16 MXU fast path, bf16 qkv / attention intermediates;
    # LN / softmax / GELU / accumulation stay f32 inside the kernels.
    params_bf16 = {name: (p.astype(jnp.bfloat16) if p.ndim == 2 else p)
                   for name, p in params.items()}
    out_bf16 = block_forward(x, params_bf16, n_head=n_head)
    out_bf16 = jax.block_until_ready(out_bf16)
    assert jnp.allclose(out_bf16, ref, atol=2e-2, rtol=2e-2), "bf16 mismatch vs reference"

    print("KERNEL_OK")
</pallas_src>

<mosaic_0001>
module attributes {stable_mosaic.version = 11 : i64} {
  func.func @_probe(%arg0: i32, %arg1: memref<8x128xf32, #tpu.memory_space<vmem>>, %arg2: memref<8x128xf32, #tpu.memory_space<vmem>>, %arg3: memref<8x128xf32, #tpu.memory_space<vmem>>) attributes {dimension_semantics = [#tpu.dimension_semantics<arbitrary>], iteration_bounds = array<i64: 2>, scalar_prefetch = 0 : i64, scratch_operands = 0 : i64, tpu.core_type = #tpu.core_type<tc>, window_params = [{pipeline_mode = #tpu.pipeline_mode<synchronous>, transform_indices = @transform_0, window_bounds = array<i64: 8, 128>}, {transform_indices = @transform_1, window_bounds = array<i64: 8, 128>}, {transform_indices = @transform_2, window_bounds = array<i64: 8, 128>}]} {
    %c0 = arith.constant 0 : index
    %c0_0 = arith.constant 0 : index
    %0 = vector.load %arg2[%c0, %c0_0] : memref<8x128xf32, #tpu.memory_space<vmem>>, vector<8x128xf32>
    %c0_1 = arith.constant 0 : index
    %c0_2 = arith.constant 0 : index
    %1 = vector.load %arg1[%c0_1, %c0_2] : memref<8x128xf32, #tpu.memory_space<vmem>>, vector<8x128xf32>
    %2 = arith.addf %0, %1 : vector<8x128xf32>
    %c0_3 = arith.constant 0 : index
    %c0_4 = arith.constant 0 : index
    %3 = vector.load %arg3[%c0_3, %c0_4] : memref<8x128xf32, #tpu.memory_space<vmem>>, vector<8x128xf32>
    tpu.vector_store %arg3[%c0_3, %c0_4], %2 {strides = array<i32>} : memref<8x128xf32, #tpu.memory_space<vmem>>, vector<8x128xf32>,
    return
  }
  func.func @transform_0(%arg0: i32) -> (i32, i32) {
    %c0_i32 = arith.constant 0 : i32
    %c0_i32_0 = arith.constant 0 : i32
    %c0_i32_1 = arith.constant 0 : i32
    return %c0_i32, %c0_i32_0 : i32, i32
  }
  func.func @transform_1(%arg0: i32) -> (i32, i32) {
    %c0_i32 = arith.constant 0 : i32
    %c0_i32_0 = arith.constant 0 : i32
    return %arg0, %c0_i32 : i32, i32
  }
  func.func @transform_2(%arg0: i32) -> (i32, i32) {
    %c0_i32 = arith.constant 0 : i32
    %c0_i32_0 = arith.constant 0 : i32
    return %arg0, %c0_i32 : i32, i32
  }
}

module attributes {stable_mosaic.version = 11 : i64} {
  func.func @_ln_qkv_kernel(%arg0: i32, %arg1: memref<16x32xf32, #tpu.memory_space<vmem>>, %arg2: memref<1x32xf32, #tpu.memory_space<vmem>>, %arg3: memref<1x32xf32, #tpu.memory_space<vmem>>, %arg4: memref<32x96xf32, #tpu.memory_space<vmem>>, %arg5: memref<1x96xf32, #tpu.memory_space<vmem>>, %arg6: memref<16x96xf32, #tpu.memory_space<vmem>>) attributes {dimension_semantics = [#tpu.dimension_semantics<parallel>], iteration_bounds = array<i64: 1>, scalar_prefetch = 0 : i64, scratch_operands = 0 : i64, tpu.core_type = #tpu.core_type<tc>, window_params = [{transform_indices = @transform_0, window_bounds = array<i64: 16, 32>}, {pipeline_mode = #tpu.pipeline_mode<synchronous>, transform_indices = @transform_1, window_bounds = array<i64: 1, 32>}, {pipeline_mode = #tpu.pipeline_mode<synchronous>, transform_indices = @transform_2, window_bounds = array<i64: 1, 32>}, {pipeline_mode = #tpu.pipeline_mode<synchronous>, transform_indices = @transform_3, window_bounds = array<i64: 32, 96>}, {pipeline_mode = #tpu.pipeline_mode<synchronous>, transform_indices = @transform_4, window_bounds = array<i64: 1, 96>}, {transform_indices = @transform_5, window_bounds = array<i64: 16, 96>}]} {
    %c0 = arith.constant 0 : index
    %c0_0 = arith.constant 0 : index
    %0 = vector.load %arg1[%c0, %c0_0] : memref<16x32xf32, #tpu.memory_space<vmem>>, vector<16x32xf32>
    %c0_1 = arith.constant 0 : index
    %c0_2 = arith.constant 0 : index
    %1 = vector.load %arg2[%c0_1, %c0_2] : memref<1x32xf32, #tpu.memory_space<vmem>>, vector<1x32xf32>
    %c0_3 = arith.constant 0 : index
    %c0_4 = arith.constant 0 : index
    %2 = vector.load %arg3[%c0_3, %c0_4] : memref<1x32xf32, #tpu.memory_space<vmem>>, vector<1x32xf32>
    %cst = arith.constant dense<0.000000e+00> : vector<16xf32>
    %3 = vector.multi_reduction <add>, %0, %cst [1] : vector<16x32xf32> to vector<16xf32>
    %4 = vector.shape_cast %3 : vector<16xf32> to vector<16x1xf32>
    %cst_5 = arith.constant 3.200000e+01 : f32
    %5 = vector.broadcast %cst_5 : f32 to vector<16x1xf32>
    %6 = arith.divf %4, %5 : vector<16x1xf32>
    %7 = vector.broadcast %6 : vector<16x1xf32> to vector<16x32xf32>
    %8 = arith.subf %0, %7 : vector<16x32xf32>
    %9 = arith.mulf %8, %8 : vector<16x32xf32>
    %cst_6 = arith.constant dense<0.000000e+00> : vector<16xf32>
    %10 = vector.multi_reduction <add>, %9, %cst_6 [1] : vector<16x32xf32> to vector<16xf32>
    %11 = vector.shape_cast %10 : vector<16xf32> to vector<16x1xf32>
    %cst_7 = arith.constant 3.200000e+01 : f32
    %12 = vector.broadcast %cst_7 : f32 to vector<16x1xf32>
    %13 = arith.divf %11, %12 : vector<16x1xf32>
    %cst_8 = arith.constant 9.99999974E-6 : f32
    %14 = vector.broadcast %cst_8 : f32 to vector<16x1xf32>
    %15 = arith.addf %13, %14 : vector<16x1xf32>
    %16 = math.rsqrt %15 : vector<16x1xf32>
    %17 = vector.broadcast %16 : vector<16x1xf32> to vector<16x32xf32>
    %18 = arith.mulf %8, %17 : vector<16x32xf32>
    %19 = vector.broadcast %1 : vector<1x32xf32> to vector<16x32xf32>
    %20 = arith.mulf %18, %19 : vector<16x32xf32>
    %21 = vector.broadcast %2 : vector<1x32xf32> to vector<16x32xf32>
    %22 = arith.addf %20, %21 : vector<16x32xf32>
    %c0_9 = arith.constant 0 : index
    %c0_10 = arith.constant 0 : index
    %23 = vector.load %arg4[%c0_9, %c0_10] : memref<32x96xf32, #tpu.memory_space<vmem>>, vector<32x96xf32>
    %cst_11 = arith.constant dense<0.000000e+00> : vector<16x96xf32>
    %24 = tpu.matmul %22, %23, %cst_11 {dimension_numbers = #tpu.dot_dimension_numbers<[1], [0], [0], [1], [0, 0, 1, 1], [], []>} : vector<16x32xf32>, vector<32x96xf32>, vector<16x96xf32> -> vector<16x96xf32>
    %c0_12 = arith.constant 0 : index
    %c0_13 = arith.constant 0 : index
    %25 = vector.load %arg5[%c0_12, %c0_13] : memref<1x96xf32, #tpu.memory_space<vmem>>, vector<1x96xf32>
    %26 = vector.broadcast %25 : vector<1x96xf32> to vector<16x96xf32>
    %27 = arith.addf %24, %26 : vector<16x96xf32>
    %c0_14 = arith.constant 0 : index
    %c0_15 = arith.constant 0 : index
    %28 = vector.load %arg6[%c0_14, %c0_15] : memref<16x96xf32, #tpu.memory_space<vmem>>, vector<16x96xf32>
    tpu.vector_store %arg6[%c0_14, %c0_15], %27 {strides = array<i32>} : memref<16x96xf32, #tpu.memory_space<vmem>>, vector<16x96xf32>,
    return
  }
  func.func @transform_0(%arg0: i32) -> (i32, i32) {
    %c0_i32 = arith.constant 0 : i32
    %c0_i32_0 = arith.constant 0 : i32
    return %arg0, %c0_i32 : i32, i32
  }
  func.func @transform_1(%arg0: i32) -> (i32, i32) {
    %c0_i32 = arith.constant 0 : i32
    %c0_i32_0 = arith.constant 0 : i32
    %c0_i32_1 = arith.constant 0 : i32
    return %c0_i32, %c0_i32_0 : i32, i32
  }
  func.func @transform_2(%arg0: i32) -> (i32, i32) {
    %c0_i32 = arith.constant 0 : i32
    %c0_i32_0 = arith.constant 0 : i32
    %c0_i32_1 = arith.constant 0 : i32
    return %c0_i32, %c0_i32_0 : i32, i32
  }
  func.func @transform_3(%arg0: i32) -> (i32, i32) {
    %c0_i32 = arith.constant 0 : i32
    %c0_i32_0 = arith.constant 0 : i32
    %c0_i32_1 = arith.constant 0 : i32
    return %c0_i32, %c0_i32_0 : i32, i32
  }
  func.func @transform_4(%arg0: i32) -> (i32, i32) {
    %c0_i32 = arith.constant 0 : i32
    %c0_i32_0 = arith.constant 0 : i32
    %c0_i32_1 = arith.constant 0 : i32
    return %c0_i32, %c0_i32_0 : i32, i32
  }
  func.func @transform_5(%arg0: i32) -> (i32, i32) {
    %c0_i32 = arith.constant 0 : i32
    %c0_i32_0 = arith.constant 0 : i32
    return %arg0, %c0_i32 : i32, i32
  }
}

</mosaic_0001>

<bundles_post_ra>
// kernel: tpu_custom_call.1
= control target key start
LH: loop header
LB: loop body
LE: loop exit
PB: predicated region body
PF: predicated region fallthrough
CT: control target
= control target key end

     0   :  { %7 = vsyncpa [#allocation3], 0  ;;  %s651_s0 = inlined_call_operand.hbm [shape: f32[8,128], index: 0, kind: input, shape index: {}]   ;;  %s652_s1 = inlined_call_operand.hbm [shape: f32[16,128], index: 1, kind: input, shape index: {}]   ;;  %s653_s2 = inlined_call_operand.hbm [shape: f32[16,128], index: 2, kind: output, shape index: {}]  }
   0x1   :  { %8 = vsyncpa [#allocation6], 0 }
   0x2   :  { %10 = vsyncpa [#allocation6 + $0x1], 0 }
   0x3   :  { %11 = vsyncpa [#allocation4], 0 }
   0x4   :  { %13 = vsyncpa [#allocation4 + $0x1], 0  ;;  %s485_s9 = smov 0   ;;  %s487_s10 = smov 0  }
   0x5   :  { %s489_s11 = smov 0   ;;  %s491_s12 = smov 0  }
   0x6 LB: > { %s506_s13 = sadd.s32 4294967295, %s465_s12   ;;  %s272_s14 = sadd.s32 4294967294, %s465_s12   ;;  %s465_s12 = sphi %s491_s12, %s676_s12   ;;  %s461_s11 = sphi %s489_s11, %s675_s11   ;;  %s457_s10 = sphi %s487_s10, %s674_s10   ;;  %s453_s9 = sphi %s485_s9, %s673_s9  }
   0x7   : > { %p60_p0 = scmp.ne.s32.totalorder %s457_s10, %s453_s9  ;;  %p654_p1 = scmp.eq.s32.totalorder %s506_s13, 0 }
   0x8   : > { %p90_p3 = scmp.eq.s32.totalorder %s272_s14, 1  ;;  %p273_p5 = scmp.ge.s32.totalorder %s465_s12, 1 }
   0x9   : > { %p515_p4 = por %p654_p1, %p60_p0  ;;  %p97_p7 = scmp.lt.s32.totalorder %s465_s12, 3 }
   0xa   : > { %p520_p6 = por %p90_p3, %p60_p0  ;;  %s467_s18 = smov [#allocation2]  }
   0xb   : > { %s658_s15 = scalar_select %p515_p4, 1, 0 }
   0xc   : > { %s659_s16 = scalar_select %p520_p6, 1, 0 }
   0xd   : > { %p525_p8 = pnand %p273_p5, %p97_p7  ;;  %s110_s19 = sshll.u32 %s467_s18, 4  ;;  %s111_s19 = int_to_ptr.vmem [resolvable:$true] %s110_s19 }
   0xe   : > { %s533_s20 = sadd.s32 1, %s465_s12   ;;  %s47_s24 = sadd.s32 1, %s461_s11 }
   0xf   : > { %s660_s17 = scalar_select %p525_p8, 1, 0 }
  0x10   : > { %p294_p10 = pneg %p525_p8  ;;  %s44_s22 = ssub.s32 %s465_s12, %s533_s20 }
  0x11   : > { %p543_p12 = scmp.eq.s32.totalorder %s44_s22, 0  ;;  %p54_p13 = scmp.ne.s32.totalorder %s461_s11, %s457_s10 }
  0x12   : > { %p537_p11 = pnand %p294_p10, %p654_p1  ;;  %s354_s25 = scalar_lea.vmem %s111_s19, 128 }
  0x13   : > { %p355_p3 = scmp.ne.s32.totalorder %s111_s19, %s354_s25  ;;  %p362_p9 = scmp.lt.s32.totalorder %s111_s19, %s111_s19 }
  0x14   : > { %p345_p0 = pneg %p537_p11  ;;  %p363_p2 = scmp.lt.s32.totalorder %s354_s25, %s354_s25 }
  0x16   : > { %p357_p5 = pnand %p355_p3, %p345_p0  ;;  %p364_p10 = por %p363_p2, %p362_p9 }
  0x18   : > { %p358_p7 = pneg %p357_p5 }
  0x1a   : > { %p365_p1 = pnand %p364_p10, %p358_p7 }
  0x1c   : > { %368 = shalt.err (!%p365_p1)
}
  0x1d   : > { %297 = dma.hbm_to_vmem [thread:$0]  (!%p537_p11), %s651_s0, 128, %s111_s19, [#allocation3]  }
  0x1e   : > { %s560_s28 = scalar_select %p543_p12, %s461_s11, %s47_s24  }
  0x1f   : > { %p55_p1 = scmp.eq.s32.totalorder %s465_s12, 0  ;;  %p663_p2 = scmp.eq.s32.totalorder %s506_s13, 1 }
  0x20   : > { %p307_p0 = scmp.lt.s32.totalorder %s465_s12, 2  ;;  %s121_s30 = sand.u32 1, %s461_s11  }
  0x21   : > { %p568_p9 = por %p663_p2, %p54_p13  ;;  %p56_p3 = por %p55_p1, %p54_p13 }
  0x22   : > { %s276_s3 = sshll.u32 %s121_s30, 3  ;;  %s277_s4 = sshll.u32 %s465_s12, 7 }
  0x23   : > { %s664_s29 = scalar_select %p568_p9, 1, 0 }
  0x24   : > { %s581_s7 = scalar_lea.hbm %s652_s1, %s277_s4  ;;  %s125_s8 = scalar_lea.vmem [#allocation5], %s276_s3 }
  0x25   : > { %s132_s14 = sshll.u32 %s125_s8, 4  ;;  %p583_p11 = pnand %p307_p0, %p56_p3  ;;  %s133_s14 = int_to_ptr.vmem [resolvable:$true] %s132_s14 }
  0x26   : > { %s122_s19 = scalar_lea.sflag [#allocation6], %s121_s30  ;;  %s369_s21 = scalar_lea.hbm %s581_s7, 128 }
  0x27   : > { %p370_p12 = scmp.ne.s32.totalorder %s581_s7, %s369_s21  ;;  %p371_p13 = pneg %p583_p11 }
  0x28   : > { %s374_s24 = scalar_lea.hbm %s652_s1, 256  ;;  %p375_p10 = scmp.lt.s32.totalorder %s581_s7, %s652_s1 }
  0x29   : > { %p372_p5 = pnand %p371_p13, %p370_p12  ;;  %p376_p1 = scmp.lt.s32.totalorder %s374_s24, %s369_s21 }
  0x2b   : > { %p373_p7 = pneg %p372_p5  ;;  %p377_p2 = por %p376_p1, %p375_p10 }
  0x2d   : > { %p378_p0 = pnand %p377_p2, %p373_p7 }
  0x2f   : > { %381 = shalt.err (!%p378_p0)
}
  0x30   : > { %s382_s27 = scalar_lea.vmem %s133_s14, 128  ;;  %s468_s30 = smov [#allocation5]  }
  0x31   : > { %p383_p3 = scmp.ne.s32.totalorder %s133_s14, %s382_s27  ;;  %s387_s3 = sshll.u32 %s468_s30, 4  ;;  %s388_s3 = int_to_ptr.vmem [resolvable:$false] %s387_s3 }
  0x32   : > { %s389_s4 = scalar_lea.vmem %s388_s3, 256  ;;  %p390_p12 = scmp.lt.s32.totalorder %s133_s14, %s388_s3 }
  0x33   : > { %p385_p6 = pnand %p383_p3, %p371_p13  ;;  %p391_p5 = scmp.lt.s32.totalorder %s389_s4, %s382_s27 }
  0x35   : > { %p386_p9 = pneg %p385_p6  ;;  %p392_p4 = por %p391_p5, %p390_p12 }
  0x37   : > { %p393_p8 = pnand %p392_p4, %p386_p9 }
  0x39   : > { %396 = shalt.err (!%p393_p8)
}
  0x3a   : > { %301 = dma.hbm_to_vmem [thread:$0]  (!%p583_p11), %s581_s7, 128, %s133_s14, %s122_s19  }
  0x3b   : > { %p666_p7 = scmp.ne.s32.totalorder %s660_s17, 0 }
  0x3c   : > { %p667_p10 = scmp.eq.s32.totalorder (!%p666_p7), %s506_s13, 0 }
  0x3d   : > { %141 = sbr.rel (%p666_p7) target bundleno = 96 (0x60), region = 28 }
  0x42   : > { %440 = dma.done.wait (%p667_p10), [#allocation3], 128   ;;  %p668_p6 = pmov %p667_p10 }
  0x43   : > { %s608_s5 = sand.u32 1, %s457_s10   ;;  %p669_p4 = scmp.ne.s32.totalorder %s658_s15, 0 }
  0x44   : > { %442 = vsyncadd (%p668_p6), [#allocation3], 4294967168  ;;  %s280_s6 = sshll.u32 %s608_s5, 3  ;;  %s148_s8 = scalar_lea.sflag [#allocation6], %s608_s5 }
  0x45   : > { %s151_s18 = scalar_lea.vmem [#allocation5], %s280_s6 }
  0x46   : > { %444 = dma.done.wait (%p669_p4), %s148_s8, 128  }
  0x47   : > { %446 = vsyncadd (%p669_p4), %s148_s8, 4294967168  ;;  %s171_s17 = scalar_lea.vmem [#allocation7], %s280_s6  ;;  %s283_s14 = sshll.u32 %s506_s13, 7  ;;  %v172_v0 = vld [vmem:[%s151_s18] sm:$0xff]  ;;  %v173_v1 = vld [vmem:[#allocation2] sm:$0xff] }
  0x48   : > { %s190_s7 = sshll.u32 %s171_s17, 4  ;;  %v174_v2 = vadd.f32 %v173_v1, %v172_v0  ;;  %s188_s22 = scalar_lea.hbm %s653_s2, %s283_s14  ;;  %s191_s7 = int_to_ptr.vmem [resolvable:$true] %s190_s7 }
  0x49   : > { %s177_s23 = scalar_lea.sflag [#allocation4], %s608_s5  ;;  %s397_s24 = scalar_lea.vmem %s191_s7, 128 }
  0x4a   : > { %175 = vst [vmem:[%s171_s17] sm:$0xff] %v174_v2  ;;  %p398_p8 = scmp.ne.s32.totalorder %s191_s7, %s397_s24  ;;  %p670_p9 = scmp.ne.s32.totalorder %s664_s29, 0 }
  0x4b   : > { %s469_s15 = smov [#allocation7]  }
  0x4c   : > { %p399_p11 = pnand %p398_p8, %p670_p9  ;;  %s401_s25 = sshll.u32 %s469_s15, 4  ;;  %s402_s25 = int_to_ptr.vmem [resolvable:$false] %s401_s25 }
  0x4d   : > { %s403_s26 = scalar_lea.vmem %s402_s25, 256  ;;  %p404_p1 = scmp.lt.s32.totalorder %s191_s7, %s402_s25 }
  0x4e   : > { %p400_p13 = pneg %p399_p11  ;;  %p405_p2 = scmp.lt.s32.totalorder %s403_s26, %s397_s24 }
  0x50   : > { %p406_p0 = por %p405_p2, %p404_p1 }
  0x52   : > { %p407_p3 = pnand %p406_p0, %p400_p13 }
  0x54   : > { %410 = shalt.err (!%p407_p3)
}
  0x55   : > { %s411_s13 = scalar_lea.hbm %s188_s22, 128  ;;  %s415_s3 = scalar_lea.hbm %s653_s2, 256 }
  0x56   : > { %p412_p12 = scmp.ne.s32.totalorder %s188_s22, %s411_s13  ;;  %p416_p10 = scmp.lt.s32.totalorder %s188_s22, %s653_s2 }
  0x57   : > { %p417_p6 = scmp.lt.s32.totalorder %s415_s3, %s411_s13 }
  0x58   : > { %p413_p5 = pnand %p412_p12, %p670_p9 }
  0x59   : > { %p418_p4 = por %p417_p6, %p416_p10 }
  0x5a   : > { %p414_p7 = pneg %p413_p5 }
  0x5c   : > { %p419_p8 = pnand %p418_p4, %p414_p7 }
  0x5e   : > { %422 = shalt.err (!%p419_p8)
}
  0x5f   : > { %292 = dma.vmem_to_hbm [thread:$0]  (%p670_p9), %s191_s7, 128, %s188_s22, %s177_s23  }
  0x60 PF: > { %s202_s6 = sand.u32 1, %s453_s9   ;;  %p671_p11 = scmp.ne.s32.totalorder %s659_s16, 0 }
  0x61   : > { %p672_p13 = scmp.ge.s32.totalorder %s465_s12, 2  ;;  %s203_s8 = scalar_lea.sflag [#allocation4], %s202_s6 }
  0x63   : > { %p303_p1 = pnand %p672_p13, %p671_p11 }
  0x65   : > { %p304_p2 = pneg %p303_p1 }
  0x67   : > { %448 = dma.done.wait (%p304_p2), %s203_s8, 128  }
  0x68   : > { %450 = vsyncadd (%p304_p2), %s203_s8, 4294967168  ;;  %p16_p0 = scmp.ge.s32.totalorder %s533_s20, 4   ;;  %s673_s9 = smov %s457_s10 }
  0x69   : > { %s674_s10 = smov %s461_s11  ;;  %s675_s11 = smov %s560_s28 }
  0x6a   : > { %s676_s12 = smov %s533_s20  ;;  %18 = sbr.rel (!%p16_p0) target bundleno = 6 (0x6), region = 78 }
  0x6f   :  { %208 = vsyncpa [#allocation3], 1 }
  0x70   :  { %210 = vsyncpa [#allocation3 + $0x1], 1 }
  0x71   :  { %211 = vsyncpa [#allocation6], 1 }
  0x72   :  { %213 = vsyncpa [#allocation6 + $0x1], 1 }
  0x73   :  { %214 = vsyncpa [#allocation4], 1 }
  0x74   :  { %216 = vsyncpa [#allocation4 + $0x1], 1 }

// kernel: tpu_custom_call.1
= control target key start
LH: loop header
LB: loop body
LE: loop exit
PB: predicated region body
PF: predicated region fallthrough
CT: control target
= control target key end

     0   :  { %10 = vsyncpa [#allocation3], 0  ;;  %s375_s0 = inlined_call_operand.hbm [shape: f32[16,32], index: 0, kind: input, shape index: {}]   ;;  %s376_s1 = inlined_call_operand.vmem [shape: f32[1,32], index: 1, kind: input, shape index: {}]   ;;  %s377_s2 = inlined_call_operand.vmem [shape: f32[1,32], index: 2, kind: input, shape index: {}]   ;;  %s378_s3 = inlined_call_operand.hbm [shape: f32[32,96], index: 3, kind: input, shape index: {}]   ;;  %s379_s4 = inlined_call_operand.vmem [shape: f32[1,96], index: 4, kind: input, shape index: {}]   ;;  %s380_s5 = inlined_call_operand.hbm [shape: f32[16,96], index: 5, kind: output, shape index: {}]  }
   0x1   :  { %11 = vsyncpa [#allocation6], 0 }
   0x2   :  { %12 = vsyncpa [#allocation4], 0  ;;  %s307_s18 = smov [#allocation2]  }
   0x3   :  { %s18_s19 = sshll.u32 %s307_s18, 4  ;;  %s19_s19 = int_to_ptr.vmem [resolvable:$true] %s18_s19 }
   0x4   :  { %s249_s20 = scalar_lea.vmem %s19_s19, 256  ;;  %p254_p1 = scmp.lt.s32.totalorder %s19_s19, %s19_s19 }
   0x5   :  { %p250_p0 = scmp.ne.s32.totalorder %s19_s19, %s249_s20  ;;  %p255_p2 = scmp.lt.s32.totalorder %s249_s20, %s249_s20 }
   0x7   :  { %p256_p3 = por %p255_p2, %p254_p1 }
   0x9   :  { %p257_p4 = pnand %p256_p3, %p250_p0 }
   0xb   :  { %260 = shalt.err (!%p257_p4)
}
   0xc   :  { %s308_s21 = smov 128   ;;  %s309_s22 = smov 8  }
   0xd   :  { %24 = dma.hbm_to_vmem [thread:$0]  %s375_s0, 256, %s19_s19, [#allocation3], %s308_s21, %s308_s21, %s309_s22  }
   0xe   :  { %s310_s25 = smov [#allocation5]  }
   0xf   :  { %s34_s26 = sshll.u32 %s310_s25, 4  ;;  %s35_s26 = int_to_ptr.vmem [resolvable:$true] %s34_s26 }
  0x10   :  { %s269_s27 = scalar_lea.vmem %s35_s26, 512  ;;  %p274_p6 = scmp.lt.s32.totalorder %s35_s26, %s35_s26 }
  0x11   :  { %p270_p5 = scmp.ne.s32.totalorder %s35_s26, %s269_s27  ;;  %p275_p7 = scmp.lt.s32.totalorder %s269_s27, %s269_s27 }
  0x13   :  { %p276_p8 = por %p275_p7, %p274_p6 }
  0x15   :  { %p277_p9 = pnand %p276_p8, %p270_p5 }
  0x17   :  { %280 = shalt.err (!%p277_p9)
}
  0x18   :  { %40 = dma.hbm_to_vmem [thread:$0]  %s378_s3, 512, %s35_s26, [#allocation6], %s308_s21, %s308_s21, %s309_s22  }
  0x19   :  { %301 = dma.done.wait [#allocation3], 256  }
  0x1a   :  { %302 = vsyncadd [#allocation3], 4294967040 }
  0x1b   :  { %303 = dma.done.wait [#allocation6], 512  }
  0x1c   :  { %304 = vsyncadd [#allocation6], 4294966784  ;;  %vm53_vm0 = vcmask 261120   ;;  %v49_v0 = vld [vmem:[#allocation2] sm:$0xff]  ;;  %v50_v1 = vld [vmem:[#allocation2 + $0x8] sm:$0xff]  ;;  %vm189_vm1 = vcmask 785408  }
  0x1d   :  { %v54_v2 = vsel %vm53_vm0, %v49_v0, 0.0  ;;  %v57_v3 = vsel %vm53_vm0, %v50_v1, 0.0  ;;  %v100_v14 = vld [vmem:[#allocation5 + $0x18] sm:$0xff]  ;;  %v99_v15 = vld [vmem:[#allocation5 + $0x10] sm:$0xff]  ;;  %v98_v16 = vld [vmem:[#allocation5 + $0x8] sm:$0xff] }
  0x1e   :  { %55 = vadd.xlane.f32.xlu0 %v54_v2  ;;  %221 = vmatprep.subr.mxu0 %v100_v14  ;;  %v97_v17 = vld [vmem:[#allocation5] sm:$0xff]  ;;  %v210_v25 = vld [vmem:[%s376_s1] ss:$0 sm:$0xff]  ;;  %s311_s1 = smov [#allocation7]  }
  0x1f   :  { %222 = vmatpush3.msra.mxu0 %v100_v14  ;;  %v211_v27 = vld [vmem:[%s377_s2] ss:$0 sm:$0xff]  ;;  %s197_s9 = sshll.u32 %s311_s1, 4  ;;  %s198_s9 = int_to_ptr.vmem [resolvable:$true] %s197_s9 }
  0x20   :  { %223 = vmatprep.subr.mxu0 %v99_v15  ;;  %v212_v34 = vld [vmem:[%s379_s4] ss:$0 sm:$0xff]  ;;  %s281_s2 = scalar_lea.vmem %s198_s9, 256  ;;  %p286_p11 = scmp.lt.s32.totalorder %s198_s9, %s198_s9 }
  0x21   :  { %224 = vmatpush3.msra.mxu0 %v99_v15  ;;  %p282_p10 = scmp.ne.s32.totalorder %s198_s9, %s281_s2  ;;  %p287_p12 = scmp.lt.s32.totalorder %s281_s2, %s281_s2 }
  0x22   :  { %58 = vadd.xlane.f32.xlu0 %v57_v3  ;;  %225 = vmatprep.subr.mxu0 %v98_v16 }
  0x23   :  { %226 = vmatpush3.msra.mxu0 %v98_v16  ;;  %p288_p13 = por %p287_p12, %p286_p11 }
  0x24   :  { %227 = vmatprep.subr.mxu0 %v97_v17 }
  0x25   :  { %228 = vmatpush3.msra.mxu0 %v97_v17  ;;  %p289_p0 = pnand %p288_p13, %p282_p10 }
  0xa7   :  { %v56_v4 = vpop.xlane.xlu0 %55 }
  0xa8   :  { %v61_v5 = vmul.f32 0.03125, %v56_v4 }
  0xaa   :  { %v63_v6 = vsub.f32 %v49_v0, %v61_v5 }
  0xab   :  { %v59_v7 = vpop.xlane.xlu0 %58 }
  0xac   :  { %v62_v8 = vmul.f32 0.03125, %v59_v7  ;;  %v65_v9 = vmul.f32 %v63_v6, %v63_v6 }
  0xae   :  { %v64_v10 = vsub.f32 %v50_v1, %v62_v8  ;;  %v67_v11 = vsel %vm53_vm0, %v65_v9, 0.0 }
  0xaf   :  { %68 = vadd.xlane.f32.xlu1 %v67_v11 }
  0xb0   :  { %v66_v12 = vmul.f32 %v64_v10, %v64_v10 }
  0xb2   :  { %v70_v13 = vsel %vm53_vm0, %v66_v12, 0.0 }
  0xb3   :  { %71 = vadd.xlane.f32.xlu1 %v70_v13 }
 0x138   :  { %v69_v18 = vpop.xlane.xlu1 %68 }
 0x139   :  { %v73_v19 = vmul.f32 0.03125, %v69_v18 }
 0x13b   :  { %v75_v20 = vadd.f32 1e-05, %v73_v19 }
 0x13c   :  { %v72_v21 = vpop.xlane.xlu1 %71 }
 0x13d   :  { %237 = vrsqrt.f32 %v75_v20  ;;  %v74_v22 = vmul.f32 0.03125, %v72_v21 }
 0x13f   :  { %v76_v23 = vadd.f32 1e-05, %v74_v22 }
 0x141   :  { %239 = vrsqrt.f32 %v76_v23 }
 0x14a   :  { %v238_v24 = vpop.eup %237 }
 0x14b   :  { %v79_v26 = vmul.f32 %v238_v24, %v63_v6 }
 0x14d   :  { %v87_v28 = vmul.f32 %v210_v25, %v79_v26 }
 0x14e   :  { %v240_v29 = vpop.eup %239 }
 0x14f   :  { %v80_v30 = vmul.f32 %v240_v29, %v64_v10  ;;  %v95_v31 = vadd.f32 %v211_v27, %v87_v28 }
 0x151   :  { %v88_v32 = vmul.f32 %v210_v25, %v80_v30  ;;  %229 = vmatprep.mubr.msk.f32.mxu0 %vm53_vm0, %v95_v31 }
 0x153   :  { %v96_v33 = vadd.f32 %v211_v27, %v88_v32 }
 0x155   :  { %230 = vmatmul.mubr.msk.f32.vlgmr.msra.gmra.mxu0 %vm53_vm0, %v96_v33 }
 0x215   :  { %v231_v35 = vpop.f32.mrf.mxu0 }
 0x216   :  { %v186_v36 = vadd.f32 %v231_v35, %v212_v34 }
 0x217   :  { %v180_v37 = vpop.f32.mrf.mxu0 }
 0x218   :  { %v181_v38 = vadd.f32 %v212_v34, %v180_v37  ;;  %191 = vst.msk [vmem:[#allocation7 + $0x8] sm:$0xff] %vm189_vm1, %v186_v36 }
 0x21a   :  { %190 = vst.msk [vmem:[#allocation7] sm:$0xff] %vm189_vm1, %v181_v38 }
 0x21b   :  { %292 = shalt.err (!%p289_p0)
}
 0x21c   :  { %203 = dma.vmem_to_hbm [thread:$0]  %s198_s9, 256, %s380_s5, [#allocation4], %s308_s21, %s308_s21, %s309_s22  }
 0x21d   :  { %305 = dma.done.wait [#allocation4], 256  }
 0x21e   :  { %306 = vsyncadd [#allocation4], 4294967040 }
 0x21f   :  { %207 = vsyncpa [#allocation3], 1 }
 0x220   :  { %208 = vsyncpa [#allocation6], 1 }
 0x221   :  { %209 = vsyncpa [#allocation4], 1 }

</bundles_post_ra>
